<compile_context>
chip_gen: v7x
topology: tpu7x:2x2x1
jax: 0.10.0
libtpu: 0.0.40
codegen_flags: <defaults>
</compile_context>

<pallas_src>
import functools

import numpy as np
import jax
import jax.numpy as jnp
from jax.experimental import pallas as pl
from jax.experimental.pallas import tpu as pltpu

EPS = 1e-5  # BatchNorm1d default eps


def _round_up(a, b):
    return (a + b - 1) // b * b


def _vmem_limit_bytes():
    """Chip-derived scoped-VMEM limit with headroom, safe on every generation.

    The tiled working set is only a few MiB, so the clamp to 56 MiB keeps the
    request valid even on v7x (64 MiB per TensorCore) while still leaving a
    comfortable margin above the defaults."""
    try:
        cap = int(getattr(pltpu.get_tpu_info(), "vmem_capacity_bytes", 0))
    except Exception:
        cap = 0
    if cap <= 0:
        cap = 64 << 20
    return max(32 << 20, min(cap - (12 << 20), 56 << 20))


# ----------------------------------------------------------------------------
# Kernels (transposed, lane-dense layout: h^T is [D, bm], rows on lanes)
# ----------------------------------------------------------------------------

def stats0_kernel(xT_ref, w0_ref, s1_ref, s2_ref):
    """Pass 1: layer-0 pre-BN activations -> per-tile sum / sum-of-squares."""
    h0 = jnp.dot(w0_ref[...], xT_ref[...], preferred_element_type=jnp.float32)
    # No bias and zero-padded input columns => padded columns of h0 are exactly
    # zero, so they contribute nothing to the sums (no validity mask needed).
    s1_ref[...] = jnp.sum(h0, axis=-1, keepdims=True)[None]        # (1, D, 1)
    s2_ref[...] = jnp.sum(h0 * h0, axis=-1, keepdims=True)[None]   # (1, D, 1)


def stats1_kernel(xT_ref, w0_ref, sc0_ref, sh0_ref, w1_ref, s1_ref, s2_ref,
                  *, m_true, bm):
    """Pass 2: recompute layer 0 (cheap at D=32), apply BN0+ReLU, layer-1
    matmul, then per-tile stats with zero-padded columns masked out."""
    h0 = jnp.dot(w0_ref[...], xT_ref[...], preferred_element_type=jnp.float32)
    a0 = jnp.maximum(h0 * sc0_ref[...] + sh0_ref[...], 0.0)
    h1 = jnp.dot(w1_ref[...], a0.astype(jnp.bfloat16),
                 preferred_element_type=jnp.float32)
    # Lane-dense validity row built from iota (padded columns are non-zero
    # here because of the BN shift, so they must be excluded from the stats).
    col0 = pl.program_id(0) * bm
    lane = jax.lax.broadcasted_iota(jnp.int32, (1, bm), 1)
    valid = (lane < (m_true - col0)).astype(jnp.float32)            # [1, bm]
    h1m = h1 * valid
    s1_ref[...] = jnp.sum(h1m, axis=-1, keepdims=True)[None]
    s2_ref[...] = jnp.sum(h1m * h1m, axis=-1, keepdims=True)[None]


def apply_kernel(xT_ref, mrow_ref, w0_ref, sc0_ref, sh0_ref,
                 w1_ref, sc1_ref, sh1_ref, w2_ref, b2_ref, o_ref):
    """Pass 3: full forward for one tile, lane-dense (full-width) store."""
    h0 = jnp.dot(w0_ref[...], xT_ref[...], preferred_element_type=jnp.float32)
    a0 = jnp.maximum(h0 * sc0_ref[...] + sh0_ref[...], 0.0)
    h1 = jnp.dot(w1_ref[...], a0.astype(jnp.bfloat16),
                 preferred_element_type=jnp.float32)
    a1 = jnp.maximum(h1 * sc1_ref[...] + sh1_ref[...], 0.0)
    h2 = jnp.dot(w2_ref[...], a1.astype(jnp.bfloat16),
                 preferred_element_type=jnp.float32) + b2_ref[...]
    o_ref[...] = h2 * mrow_ref[...]


# ----------------------------------------------------------------------------
# Wrapper
# ----------------------------------------------------------------------------

def masked_mlp(x, mask, params):
    """x: [B, N, D] f32, mask: [B, N] f32.

    params: (w0, b0, g0, be0, w1, b1, g1, be1, w2, b2) in PyTorch layout
    (weights [out, in], bias/gamma/beta 1-D [D]).  b0/b1 are accepted but not
    used (they cancel exactly against the following BatchNorm)."""
    w0, _b0, g0, be0, w1, _b1, g1, be1, w2, b2 = params
    B, N, D = x.shape
    M = B * N

    bm = min(8192, _round_up(max(M, 1), 128))   # lanes per tile
    Mp = _round_up(M, bm)
    n_tiles = Mp // bm

    # Masked, transposed, zero-padded activations; bf16 for HBM + MXU.
    xm = (x.astype(jnp.float32) * mask[:, :, None].astype(jnp.float32))
    xm = xm.reshape(M, D)
    xT = jnp.zeros((D, Mp), jnp.bfloat16).at[:, :M].set(
        xm.T.astype(jnp.bfloat16))
    m_row = jnp.zeros((1, Mp), jnp.float32).at[:, :M].set(
        mask.reshape(1, M).astype(jnp.float32))

    w0b = w0.astype(jnp.bfloat16)
    w1b = w1.astype(jnp.bfloat16)
    w2b = w2.astype(jnp.bfloat16)
    col = lambda v: jnp.asarray(v).reshape(D, 1).astype(jnp.float32)

    cparams = pltpu.CompilerParams(
        dimension_semantics=("parallel",),
        vmem_limit_bytes=_vmem_limit_bytes())

    x_spec = pl.BlockSpec((D, bm), lambda i: (0, i))
    row_spec = pl.BlockSpec((1, bm), lambda i: (0, i))
    w_spec = pl.BlockSpec((D, D), lambda i: (0, 0))
    c_spec = pl.BlockSpec((D, 1), lambda i: (0, 0))
    stat_spec = pl.BlockSpec((1, D, 1), lambda i: (i, 0, 0))
    stat_shape = jax.ShapeDtypeStruct((n_tiles, D, 1), jnp.float32)

    inv_m = 1.0 / M

    # ---- Pass 1: layer-0 BatchNorm statistics -------------------------------
    s1_0, s2_0 = pl.pallas_call(
        stats0_kernel,
        grid=(n_tiles,),
        in_specs=[x_spec, w_spec],
        out_specs=(stat_spec, stat_spec),
        out_shape=(stat_shape, stat_shape),
        compiler_params=cparams,
    )(xT, w0b)
    mu0 = jnp.sum(s1_0, axis=0) * inv_m                              # (D, 1)
    var0 = jnp.maximum(jnp.sum(s2_0, axis=0) * inv_m - mu0 * mu0, 0.0)
    sc0 = col(g0) * jax.lax.rsqrt(var0 + EPS)
    sh0 = col(be0) - mu0 * sc0

    # ---- Pass 2: layer-1 BatchNorm statistics -------------------------------
    s1_1, s2_1 = pl.pallas_call(
        functools.partial(stats1_kernel, m_true=M, bm=bm),
        grid=(n_tiles,),
        in_specs=[x_spec, w_spec, c_spec, c_spec, w_spec],
        out_specs=(stat_spec, stat_spec),
        out_shape=(stat_shape, stat_shape),
        compiler_params=cparams,
    )(xT, w0b, sc0, sh0, w1b)
    mu1 = jnp.sum(s1_1, axis=0) * inv_m
    var1 = jnp.maximum(jnp.sum(s2_1, axis=0) * inv_m - mu1 * mu1, 0.0)
    sc1 = col(g1) * jax.lax.rsqrt(var1 + EPS)
    sh1 = col(be1) - mu1 * sc1

    # ---- Pass 3: apply BN0/BN1 + final Linear + mask ------------------------
    outT = pl.pallas_call(
        apply_kernel,
        grid=(n_tiles,),
        in_specs=[x_spec, row_spec, w_spec, c_spec, c_spec,
                  w_spec, c_spec, c_spec, w_spec, c_spec],
        out_specs=pl.BlockSpec((D, bm), lambda i: (0, i)),
        out_shape=jax.ShapeDtypeStruct((D, Mp), jnp.float32),
        compiler_params=cparams,
    )(xT, m_row, w0b, sc0, sh0, w1b, sc1, sh1, w2b, col(b2))

    # TODO(synk): keep the [D, M] layout if the consumer allows (saves an HBM
    # round-trip for the transpose back), or transpose in-kernel on the XLU.
    return outT[:, :M].T.reshape(B, N, D)


# ----------------------------------------------------------------------------
# Reference (pure JAX, models the kernel's single-pass bf16 MXU numerics)
# ----------------------------------------------------------------------------

def masked_mlp_reference(x, mask, params):
    """PyTorch forward (training-mode BatchNorm) with matmul inputs rounded to
    bf16 and f32 accumulation — the same matmul numerics as the kernel.
    Includes b0/b1 and two-pass variance (both differ only at ~1e-7)."""
    w0, b0, g0, be0, w1, b1, g1, be1, w2, b2 = params
    B, N, D = x.shape
    m3 = mask[:, :, None]

    def bdot(a, b):
        return jnp.matmul(a.astype(jnp.bfloat16).astype(jnp.float32),
                          b.astype(jnp.bfloat16).astype(jnp.float32),
                          precision=jax.lax.Precision.HIGHEST)

    h = (x * m3).reshape(B * N, D)
    for w, b, g, be in ((w0, b0, g0, be0), (w1, b1, g1, be1)):
        h = bdot(h, w.T) + b
        mu = h.mean(0, keepdims=True)
        var = jnp.square(h - mu).mean(0, keepdims=True)
        h = (h - mu) / jnp.sqrt(var + EPS) * g + be
        h = jnp.maximum(h, 0.0)
    h = bdot(h, w2.T) + b2
    return h.reshape(B, N, D) * m3


if __name__ == "__main__":
    B, N, D = 2, 8, 32  # mlp_layers=3, dim=32
    key = jax.random.PRNGKey(0)
    keys = jax.random.split(key, 6)

    x = jax.random.normal(keys[0], (B, N, D), dtype=jnp.float32)
    mask = (jax.random.uniform(keys[1], (B, N)) > 0.3).astype(jnp.float32)

    def linear_init(k, din, dout):
        # PyTorch nn.Linear default: U(-1/sqrt(fan_in), 1/sqrt(fan_in)),
        # weight stored [out, in].
        k1, k2 = jax.random.split(k)
        bound = 1.0 / np.sqrt(din)
        w = jax.random.uniform(k1, (dout, din), jnp.float32, -bound, bound)
        b = jax.random.uniform(k2, (dout,), jnp.float32, -bound, bound)
        return w, b

    w0, b0 = linear_init(keys[2], D, D)
    w1, b1 = linear_init(keys[3], D, D)
    w2, b2 = linear_init(keys[4], D, D)
    # BatchNorm1d default init: weight=1, bias=0
    g0, be0 = jnp.ones((D,), jnp.float32), jnp.zeros((D,), jnp.float32)
    g1, be1 = jnp.ones((D,), jnp.float32), jnp.zeros((D,), jnp.float32)

    params = [w0, b0, g0, be0, w1, b1, g1, be1, w2, b2]

    out = jax.block_until_ready(masked_mlp(x, mask, params))
    ref = masked_mlp_reference(x, mask, params)

    assert out.shape == (B, N, D)
    # Tolerance covers accumulation-order / one-pass-variance differences; the
    # remaining gap to a strict-f32 PyTorch forward is bf16-matmul rounding
    # (deliberate, per the performance review).
    assert np.allclose(np.asarray(out), np.asarray(ref), atol=5e-3, rtol=5e-3), \
        "Pallas kernel output does not match reference"

    print("KERNEL_OK")
</pallas_src>

<mosaic_0001>
module attributes {stable_mosaic.version = 11 : i64} {
  func.func @stats0_kernel(%arg0: i32, %arg1: memref<32x128xbf16, #tpu.memory_space<vmem>>, %arg2: memref<32x32xbf16, #tpu.memory_space<vmem>>, %arg3: memref<1x32x1xf32, #tpu.memory_space<vmem>>, %arg4: memref<1x32x1xf32, #tpu.memory_space<vmem>>) attributes {dimension_semantics = [#tpu.dimension_semantics<parallel>], iteration_bounds = array<i64: 1>, scalar_prefetch = 0 : i64, scratch_operands = 0 : i64, tpu.core_type = #tpu.core_type<tc>, window_params = [{transform_indices = @transform_0, window_bounds = array<i64: 32, 128>}, {pipeline_mode = #tpu.pipeline_mode<synchronous>, transform_indices = @transform_1, window_bounds = array<i64: 32, 32>}, {transform_indices = @transform_2, window_bounds = array<i64: 1, 32, 1>}, {transform_indices = @transform_3, window_bounds = array<i64: 1, 32, 1>}]} {
    %c0 = arith.constant 0 : index
    %c0_0 = arith.constant 0 : index
    %0 = vector.load %arg2[%c0, %c0_0] : memref<32x32xbf16, #tpu.memory_space<vmem>>, vector<32x32xbf16>
    %c0_1 = arith.constant 0 : index
    %c0_2 = arith.constant 0 : index
    %1 = vector.load %arg1[%c0_1, %c0_2] : memref<32x128xbf16, #tpu.memory_space<vmem>>, vector<32x128xbf16>
    %cst = arith.constant dense<0.000000e+00> : vector<32x128xf32>
    %2 = tpu.matmul %0, %1, %cst {dimension_numbers = #tpu.dot_dimension_numbers<[1], [0], [0], [1], [0, 0, 1, 1], [], []>} : vector<32x32xbf16>, vector<32x128xbf16>, vector<32x128xf32> -> vector<32x128xf32>
    %cst_3 = arith.constant dense<0.000000e+00> : vector<32xf32>
    %3 = vector.multi_reduction <add>, %2, %cst_3 [1] : vector<32x128xf32> to vector<32xf32>
    %4 = vector.shape_cast %3 : vector<32xf32> to vector<32x1xf32>
    %5 = vector.shape_cast %4 : vector<32x1xf32> to vector<1x32x1xf32>
    %c0_4 = arith.constant 0 : index
    %c0_5 = arith.constant 0 : index
    %c0_6 = arith.constant 0 : index
    %6 = vector.load %arg3[%c0_4, %c0_5, %c0_6] : memref<1x32x1xf32, #tpu.memory_space<vmem>>, vector<1x32x1xf32>
    tpu.vector_store %arg3[%c0_4, %c0_5, %c0_6], %5 {strides = array<i32>} : memref<1x32x1xf32, #tpu.memory_space<vmem>>, vector<1x32x1xf32>,
    %7 = arith.mulf %2, %2 : vector<32x128xf32>
    %cst_7 = arith.constant dense<0.000000e+00> : vector<32xf32>
    %8 = vector.multi_reduction <add>, %7, %cst_7 [1] : vector<32x128xf32> to vector<32xf32>
    %9 = vector.shape_cast %8 : vector<32xf32> to vector<32x1xf32>
    %10 = vector.shape_cast %9 : vector<32x1xf32> to vector<1x32x1xf32>
    %c0_8 = arith.constant 0 : index
    %c0_9 = arith.constant 0 : index
    %c0_10 = arith.constant 0 : index
    %11 = vector.load %arg4[%c0_8, %c0_9, %c0_10] : memref<1x32x1xf32, #tpu.memory_space<vmem>>, vector<1x32x1xf32>
    tpu.vector_store %arg4[%c0_8, %c0_9, %c0_10], %10 {strides = array<i32>} : memref<1x32x1xf32, #tpu.memory_space<vmem>>, vector<1x32x1xf32>,
    return
  }
  func.func @transform_0(%arg0: i32) -> (i32, i32) {
    %c0_i32 = arith.constant 0 : i32
    %c0_i32_0 = arith.constant 0 : i32
    return %c0_i32, %arg0 : i32, i32
  }
  func.func @transform_1(%arg0: i32) -> (i32, i32) {
    %c0_i32 = arith.constant 0 : i32
    %c0_i32_0 = arith.constant 0 : i32
    %c0_i32_1 = arith.constant 0 : i32
    return %c0_i32, %c0_i32_0 : i32, i32
  }
  func.func @transform_2(%arg0: i32) -> (i32, i32, i32) {
    %c0_i32 = arith.constant 0 : i32
    %c0_i32_0 = arith.constant 0 : i32
    %c0_i32_1 = arith.constant 0 : i32
    return %arg0, %c0_i32, %c0_i32_0 : i32, i32, i32
  }
  func.func @transform_3(%arg0: i32) -> (i32, i32, i32) {
    %c0_i32 = arith.constant 0 : i32
    %c0_i32_0 = arith.constant 0 : i32
    %c0_i32_1 = arith.constant 0 : i32
    return %arg0, %c0_i32, %c0_i32_0 : i32, i32, i32
  }
}

</mosaic_0001>

<bundles_post_ra>
// kernel: tpu_custom_call.1
= control target key start
LH: loop header
LB: loop body
LE: loop exit
PB: predicated region body
PF: predicated region fallthrough
CT: control target
= control target key end

     0   :  { %9 = vsyncpa [#allocation3], 0  ;;  %s321_s0 = inlined_call_operand.hbm [shape: bf16[32,128], index: 0, kind: input, shape index: {}]   ;;  %s322_s1 = inlined_call_operand.hbm [shape: bf16[32,32], index: 1, kind: input, shape index: {}]   ;;  %s323_s2 = inlined_call_operand.vmem [shape: f32[1,32,1], index: 2, kind: output, shape index: {0}]   ;;  %s324_s3 = inlined_call_operand.vmem [shape: f32[1,32,1], index: 3, kind: output, shape index: {1}]  }
   0x1   :  { %10 = vsyncpa [#allocation5], 0  ;;  %s241_s12 = smov [#allocation2]   ;;  %s193_s16 = scalar_lea.hbm %s321_s0, 256 }
   0x2   :  { %s16_s13 = sshll.u32 %s241_s12, 4  ;;  %p194_p0 = scmp.ne.s32.totalorder %s321_s0, %s193_s16  ;;  %s17_s13 = int_to_ptr.vmem [resolvable:$true] %s16_s13 }
   0x3   :  { %p197_p1 = scmp.lt.u32.totalorder %s193_s16, %s321_s0 }
   0x5   :  { %p199_p2 = pnand %p197_p1, %p194_p0 }
   0x7   :  { %202 = shalt.err (!%p199_p2)
}
   0x8   :  { %s203_s21 = scalar_lea.vmem %s17_s13, 256  ;;  %p208_p4 = scmp.lt.s32.totalorder %s17_s13, %s17_s13 }
   0x9   :  { %p204_p3 = scmp.ne.s32.totalorder %s17_s13, %s203_s21  ;;  %p209_p5 = scmp.lt.s32.totalorder %s203_s21, %s203_s21 }
   0xb   :  { %p210_p6 = por %p209_p5, %p208_p4 }
   0xd   :  { %p211_p7 = pnand %p210_p6, %p204_p3 }
   0xf   :  { %214 = shalt.err (!%p211_p7)
}
  0x10   :  { %s242_s22 = smov 64   ;;  %s243_s23 = smov 4  }
  0x11   :  { %22 = dma.hbm_to_vmem [thread:$0]  %s321_s0, 256, %s17_s13, [#allocation3], %s242_s22, %s242_s22, %s243_s23  }
  0x12   :  { %s244_s26 = smov [#allocation4]   ;;  %s215_s30 = scalar_lea.hbm %s322_s1, 256 }
  0x13   :  { %s28_s27 = sshll.u32 %s244_s26, 4  ;;  %p216_p8 = scmp.ne.s32.totalorder %s322_s1, %s215_s30  ;;  %s29_s27 = int_to_ptr.vmem [resolvable:$true] %s28_s27 }
  0x14   :  { %p219_p9 = scmp.lt.u32.totalorder %s215_s30, %s322_s1 }
  0x16   :  { %p221_p10 = pnand %p219_p9, %p216_p8 }
  0x18   :  { %224 = shalt.err (!%p221_p10)
}
  0x19   :  { %s225_s8 = scalar_lea.vmem %s29_s27, 256  ;;  %p230_p12 = scmp.lt.s32.totalorder %s29_s27, %s29_s27 }
  0x1a   :  { %p226_p11 = scmp.ne.s32.totalorder %s29_s27, %s225_s8  ;;  %p231_p13 = scmp.lt.s32.totalorder %s225_s8, %s225_s8 }
  0x1c   :  { %p232_p0 = por %p231_p13, %p230_p12 }
  0x1e   :  { %p233_p1 = pnand %p232_p0, %p226_p11 }
  0x20   :  { %236 = shalt.err (!%p233_p1)
}
  0x21   :  { %34 = dma.hbm_to_vmem [thread:$0]  %s322_s1, 256, %s29_s27, [#allocation5], %s242_s22, %s242_s22, %s243_s23  }
  0x22   :  { %237 = dma.done.wait [#allocation3], 256  }
  0x23   :  { %238 = vsyncadd [#allocation3], 4294967040 }
  0x24   :  { %239 = dma.done.wait [#allocation5], 256  }
  0x25   :  { %240 = vsyncadd [#allocation5], 4294967040  ;;  %v189_v0 = vld [vmem:[#allocation2] sm:$0xff]   ;;  %v190_v1 = vld [vmem:[#allocation2 + $0x8] sm:$0xff]   ;;  %vm72_vm0 = vcmask 261120   ;;  %vm136_vm1 = vcmask 7168  }
  0x26   :  { %177 = vmatprep.subr.bf16.mxu0 %v189_v0  ;;  %v191_v2 = vld [vmem:[#allocation4] sm:$0xff]   ;;  %v192_v3 = vld [vmem:[#allocation4 + $0x8] sm:$0xff]  }
  0x27   :  { %178 = vmatpush3.bf16.msra.mxu0 %v189_v0  ;;  %181 = vmatprep.mubr.msk.bf16.mxu0 %vm72_vm0, %v191_v2 }
  0x28   :  { %179 = vmatprep.subr.bf16.mxu0 %v190_v1 }
  0x2b   :  { %180 = vmatpush3.bf16.msra.mxu0 %v190_v1 }
  0x2e   :  { %182 = vmatmul.mubr.msk.bf16.vlgmr.msra.gmra.mrb[0].mxu0 %vm72_vm0, %v192_v3 }
 0x101   :  { %v183_v4 = vpop.f32.mrb[0].mxu0 }
 0x102   :  { %132 = vadd.xlane.f32.xlu1 %v183_v4  ;;  %v113_v5 = vpop.f32.mrb[1].mxu0  ;;  %v143_v11 = vmul.f32 %v183_v4, %v183_v4 }
 0x103   :  { %128 = vadd.xlane.f32.xlu0 %v113_v5  ;;  %v184_v6 = vpop.f32.mrb[2].mxu0  ;;  %v141_v9 = vmul.f32 %v113_v5, %v113_v5 }
 0x104   :  { %v116_v7 = vpop.f32.mrb[3].mxu0  ;;  %v144_v10 = vmul.f32 %v184_v6, %v184_v6 }
 0x105   :  { %v142_v8 = vmul.f32 %v116_v7, %v116_v7 }
 0x106   :  { %134 = vadd.xlane.f32.xlu1 %v184_v6 }
 0x107   :  { %130 = vadd.xlane.f32.xlu0 %v116_v7 }
 0x10a   :  { %147 = vadd.xlane.f32.xlu1 %v142_v8 }
 0x10b   :  { %145 = vadd.xlane.f32.xlu0 %v141_v9 }
 0x10e   :  { %151 = vadd.xlane.f32.xlu1 %v144_v10 }
 0x10f   :  { %149 = vadd.xlane.f32.xlu0 %v143_v11 }
 0x18f   :  { %v133_v12 = vpop.xlane.xlu1 %132 }
 0x190   :  { %139 = vst.msk [vmem:[%s323_s2 + $0x10] sm:$0xff] %vm136_vm1, %v133_v12  ;;  %v129_v13 = vpop.xlane.xlu0 %128 }
 0x191   :  { %137 = vst.msk [vmem:[%s323_s2] sm:$0xff] %vm136_vm1, %v129_v13 }
 0x193   :  { %v135_v14 = vpop.xlane.xlu1 %134 }
 0x194   :  { %140 = vst.msk [vmem:[%s323_s2 + $0x18] sm:$0xff] %vm136_vm1, %v135_v14  ;;  %v131_v15 = vpop.xlane.xlu0 %130 }
 0x195   :  { %138 = vst.msk [vmem:[%s323_s2 + $0x8] sm:$0xff] %vm136_vm1, %v131_v15 }
 0x197   :  { %v148_v16 = vpop.xlane.xlu1 %147 }
 0x198   :  { %154 = vst.msk [vmem:[%s324_s3 + $0x8] sm:$0xff] %vm136_vm1, %v148_v16  ;;  %v146_v17 = vpop.xlane.xlu0 %145 }
 0x199   :  { %153 = vst.msk [vmem:[%s324_s3] sm:$0xff] %vm136_vm1, %v146_v17 }
 0x19b   :  { %v152_v18 = vpop.xlane.xlu1 %151 }
 0x19c   :  { %156 = vst.msk [vmem:[%s324_s3 + $0x18] sm:$0xff] %vm136_vm1, %v152_v18  ;;  %v150_v19 = vpop.xlane.xlu0 %149 }
 0x19d   :  { %155 = vst.msk [vmem:[%s324_s3 + $0x10] sm:$0xff] %vm136_vm1, %v150_v19 }
 0x19e   :  { %165 = vsyncpa [#allocation3], 1 }
 0x19f   :  { %166 = vsyncpa [#allocation5], 1 }

</bundles_post_ra>
